<compile_context>
chip_gen: v7x
topology: tpu7x:2x2x1
jax: 0.10.0
libtpu: 0.0.40
codegen_flags: <defaults>
</compile_context>

<pallas_src>
import functools

import jax
import jax.numpy as jnp
from jax.experimental import pallas as pl
from jax.experimental.pallas import tpu as pltpu


def _sdpa_kernel(*refs, temperature, attn_type, mask_mode):
    """One (batch element, Lq-tile) grid step.

    refs (mask_mode == "none"): q, k, v, out, attn
    refs (otherwise):           q, k, v, mask, out, attn
    """
    if mask_mode == "none":
        q_ref, k_ref, v_ref, out_ref, attn_ref = refs
        mask_ref = None
    else:
        q_ref, k_ref, v_ref, mask_ref, out_ref, attn_ref = refs

    q = q_ref[0]          # (TQ, D)
    k = k_ref[0]          # (Lk, D)
    v = v_ref[0]          # (Lk, Dv)

    # scores = (q @ k^T) / temperature.  Contract the last dims of both operands so the MXU
    # consumes k directly (transposed-RHS path, no XLU transpose), f32 accumulation.
    scores = jax.lax.dot_general(
        q, k,
        dimension_numbers=(((1,), (1,)), ((), ())),
        preferred_element_type=jnp.float32,
    ) * jnp.float32(1.0 / temperature)

    if mask_mode != "none":
        # Mask is streamed in its native integer dtype; nonzero == masked (torch masked_fill).
        #   "bcast": (1, Lk) key-padding row, broadcast over the TQ query rows.
        #   "full" : (TQ, Lk) dense mask tile.
        m = mask_ref[0]
        scores = jnp.where(m != 0, jnp.float32(-1000000.0), scores)

    if attn_type == "softmax":
        s_max = jnp.max(scores, axis=-1, keepdims=True)
        e = jnp.exp(scores - s_max)
        denom = jnp.sum(e, axis=-1, keepdims=True)
        # Exact division so exported attention rows sum to 1 (matches torch softmax); the kernel
        # is HBM-bound so the extra EUP work is hidden.
        attn = e / denom
    else:  # 'sigmoid'
        attn = jax.nn.sigmoid(scores)

    # dropout (eval mode) == identity.

    out = jnp.dot(attn.astype(v.dtype), v, preferred_element_type=jnp.float32)

    out_ref[0] = out.astype(out_ref.dtype)
    attn_ref[0] = attn.astype(attn_ref.dtype)


@functools.lru_cache(maxsize=None)
def _vmem_limits():
    """(vmem_limit_bytes for CompilerParams, per-step VMEM budget for tile selection)."""
    try:
        cap = int(pltpu.get_tpu_info().vmem_capacity_bytes)   # 128 MiB v5e/v6e, 64 MiB v7x
    except Exception:
        cap = 64 * 1024 * 1024                                # conservative fallback
    limit = (cap * 3) // 4            # 96 MiB on v5e/v6e, 48 MiB on v7x
    budget = max(limit - (4 << 20), 8 << 20)   # headroom for Mosaic internal scratch
    return limit, budget


def _choose_tq(Lq, Lk, D, Dv, itemsize, attn_itemsize, mask_mode, mask_itemsize, budget):
    """Largest legal TQ that fits the generation-aware VMEM budget.

    Returns (TQ, kv_buffer_count).  kv_buffer_count == 1 means single-buffered full-Lk k/v
    (they only change on the outer batch axis, so the exposed per-batch DMA is negligible).
    """
    kv_bytes = Lk * (D + Dv) * itemsize

    def per_step(tq, kv_bufs):
        b = 2 * tq * (D + Dv) * itemsize        # q + out blocks (double-buffered)
        b += 2 * tq * Lk * attn_itemsize        # attn block (double-buffered)
        if mask_mode == "full":
            b += 2 * tq * Lk * mask_itemsize
        elif mask_mode == "bcast":
            b += 2 * Lk * mask_itemsize
        b += kv_bufs * kv_bytes                 # full-Lk k and v blocks
        return b

    candidates = [t for t in (1024, 512, 256, 128, 64, 32, 16, 8) if Lq % t == 0]
    for t in candidates:
        if per_step(t, 2) <= budget:
            return t, 2
    if candidates:
        # Even the smallest tile blew the budget: keep the smallest legal tile (never full Lq)
        # and single-buffer k/v.
        return candidates[-1], 1
    # Lq is not a multiple of 8: the only legal block is the full Lq extent.
    return Lq, (2 if per_step(Lq, 2) <= budget else 1)


@functools.partial(jax.jit, static_argnames=("temperature", "attn_type", "attn_dtype"))
def scaled_dot_product_attention(q, k, v, attn_mask=None, *,
                                 temperature, attn_type="softmax", attn_dtype=None):
    B, Lq, D = q.shape
    _, Lk, _ = k.shape
    _, _, Dv = v.shape

    itemsize = jnp.dtype(q.dtype).itemsize
    attn_out_dtype = jnp.dtype(attn_dtype) if attn_dtype is not None else jnp.dtype(q.dtype)
    attn_itemsize = attn_out_dtype.itemsize

    # ---- mask preprocessing (shape only; dtype is streamed natively) ----------------------
    if attn_mask is None:
        mask_mode, mask_arr = "none", None
    else:
        m = attn_mask
        if m.dtype == jnp.bool_:
            m = m.astype(jnp.int8)                    # 1 B -> 1 B; bool refs are awkward on TPU
        if m.ndim == 2:                               # (B, Lk) key-padding mask
            mask_mode, mask_arr = "bcast", m.reshape(B, 1, Lk)
        elif m.ndim == 3 and m.shape[1] == 1:         # (B, 1, Lk) key-padding mask
            mask_mode, mask_arr = "bcast", m
        else:                                         # (B, Lq, Lk) dense mask
            mask_mode, mask_arr = "full", m
    mask_itemsize = jnp.dtype(mask_arr.dtype).itemsize if mask_arr is not None else 0

    # ---- tiling --------------------------------------------------------------------------
    vmem_limit, vmem_budget = _vmem_limits()
    TQ, kv_bufs = _choose_tq(Lq, Lk, D, Dv, itemsize, attn_itemsize,
                             mask_mode, mask_itemsize, vmem_budget)
    n_q = Lq // TQ

    kv_kwargs = dict(pipeline_mode=pl.Buffered(1)) if kv_bufs == 1 else {}

    in_specs = [
        pl.BlockSpec((1, TQ, D), lambda b, iq: (b, iq, 0)),
        pl.BlockSpec((1, Lk, D), lambda b, iq: (b, 0, 0), **kv_kwargs),
        pl.BlockSpec((1, Lk, Dv), lambda b, iq: (b, 0, 0), **kv_kwargs),
    ]
    args = [q, k, v]
    if mask_mode == "full":
        in_specs.append(pl.BlockSpec((1, TQ, Lk), lambda b, iq: (b, iq, 0)))
        args.append(mask_arr)
    elif mask_mode == "bcast":
        in_specs.append(pl.BlockSpec((1, 1, Lk), lambda b, iq: (b, 0, 0)))
        args.append(mask_arr)

    out_specs = [
        pl.BlockSpec((1, TQ, Dv), lambda b, iq: (b, iq, 0)),
        pl.BlockSpec((1, TQ, Lk), lambda b, iq: (b, iq, 0)),
    ]
    out_shapes = (
        jax.ShapeDtypeStruct((B, Lq, Dv), q.dtype),
        jax.ShapeDtypeStruct((B, Lq, Lk), attn_out_dtype),
    )

    mask_bytes = (mask_arr.size * mask_itemsize) if mask_arr is not None else 0
    cost = pl.CostEstimate(
        flops=int(2 * B * Lq * Lk * (D + Dv)),
        transcendentals=int(B * Lq * Lk),
        bytes_accessed=int((B * Lq * D + B * Lk * D + B * Lk * Dv + B * Lq * Dv) * itemsize
                           + B * Lq * Lk * attn_itemsize + mask_bytes),
    )

    kernel = functools.partial(
        _sdpa_kernel,
        temperature=float(temperature),
        attn_type=attn_type,
        mask_mode=mask_mode,
    )

    # B > 1: prefer splitting the (v7x) megacore on the batch axis so each core keeps its
    # full-Lk k/v resident across its Lq tiles (no duplicated k/v DMA).
    dim_sem = ("parallel", "arbitrary") if B > 1 else ("parallel", "parallel")

    return pl.pallas_call(
        kernel,
        out_shape=out_shapes,
        grid_spec=pltpu.PrefetchScalarGridSpec(
            num_scalar_prefetch=0,
            grid=(B, n_q),
            in_specs=in_specs,
            out_specs=out_specs,
        ),
        compiler_params=pltpu.CompilerParams(
            dimension_semantics=dim_sem,
            vmem_limit_bytes=int(vmem_limit),
        ),
        cost_estimate=cost,
    )(*args)


def _reference(q, k, v, attn_mask, temperature, attn_type="softmax"):
    attn = jnp.einsum("bqd,bkd->bqk", q, k) / temperature
    if attn_mask is not None:
        m = attn_mask
        if m.ndim == 2:
            m = m[:, None, :]
        attn = jnp.where(m != 0, -1000000.0, attn)
    if attn_type == "softmax":
        attn = jax.nn.softmax(attn, axis=2)
    else:
        attn = jax.nn.sigmoid(attn)
    out = jnp.einsum("bqk,bkd->bqd", attn, v)
    return out, attn


if __name__ == "__main__":
    key = jax.random.PRNGKey(0)
    kq, kk, kv, km = jax.random.split(key, 4)

    # Small shapes matching the module's test-sized use.
    B, Lq, Lk, D, Dv = 2, 8, 8, 32, 32
    temperature = float(D) ** 0.5

    q = jax.random.normal(kq, (B, Lq, D), dtype=jnp.float32)
    k = jax.random.normal(kk, (B, Lk, D), dtype=jnp.float32)
    v = jax.random.normal(kv, (B, Lk, Dv), dtype=jnp.float32)
    dense_mask = (jax.random.uniform(km, (B, Lq, Lk)) < 0.2).astype(jnp.int32)

    # 1) dense (B, Lq, Lk) mask, streamed in native int32, softmax.
    out, attn = scaled_dot_product_attention(
        q, k, v, dense_mask, temperature=temperature, attn_type="softmax")
    jax.block_until_ready((out, attn))
    ref_out, ref_attn = _reference(q, k, v, dense_mask, temperature)
    assert jnp.allclose(out, ref_out, atol=2e-3, rtol=2e-3), "output mismatch (dense mask)"
    assert jnp.allclose(attn, ref_attn, atol=2e-3, rtol=2e-3), "attn mismatch (dense mask)"

    # 2) no-mask path (nothing extra is streamed).
    out2, attn2 = scaled_dot_product_attention(
        q, k, v, None, temperature=temperature, attn_type="softmax")
    jax.block_until_ready((out2, attn2))
    ref_out2, ref_attn2 = _reference(q, k, v, None, temperature)
    assert jnp.allclose(out2, ref_out2, atol=2e-3, rtol=2e-3)
    assert jnp.allclose(attn2, ref_attn2, atol=2e-3, rtol=2e-3)

    # 3) sigmoid attention path.
    out3, attn3 = scaled_dot_product_attention(
        q, k, v, dense_mask, temperature=temperature, attn_type="sigmoid")
    jax.block_until_ready((out3, attn3))
    ref_out3, ref_attn3 = _reference(q, k, v, dense_mask, temperature, attn_type="sigmoid")
    assert jnp.allclose(out3, ref_out3, atol=2e-3, rtol=2e-3)
    assert jnp.allclose(attn3, ref_attn3, atol=2e-3, rtol=2e-3)

    # 4) (B, Lk) key-padding mask broadcast over Lq (no (B, Lq, Lk) mask stream).
    kp_mask = (jax.random.uniform(km, (B, Lk)) < 0.3).astype(jnp.int8)
    out4, attn4 = scaled_dot_product_attention(
        q, k, v, kp_mask, temperature=temperature, attn_type="softmax")
    jax.block_until_ready((out4, attn4))
    ref_out4, ref_attn4 = _reference(q, k, v, kp_mask, temperature)
    assert jnp.allclose(out4, ref_out4, atol=2e-3, rtol=2e-3), "output mismatch (kp mask)"
    assert jnp.allclose(attn4, ref_attn4, atol=2e-3, rtol=2e-3), "attn mismatch (kp mask)"

    # 5) optional bf16 attn writeback (halves the dominant HBM stream), looser attn tolerance.
    out5, attn5 = scaled_dot_product_attention(
        q, k, v, kp_mask, temperature=temperature, attn_type="softmax",
        attn_dtype=jnp.bfloat16)
    jax.block_until_ready((out5, attn5))
    assert jnp.allclose(out5, ref_out4, atol=2e-3, rtol=2e-3)
    assert jnp.allclose(attn5.astype(jnp.float32), ref_attn4, atol=1e-2, rtol=1e-2)

    # 6) larger shape exercising the Lq tiling + broadcast-mask path.
    B2, Lq2, Lk2, D2, Dv2 = 2, 512, 512, 64, 64
    temperature2 = float(D2) ** 0.5
    kq2, kk2, kv2, km2 = jax.random.split(jax.random.PRNGKey(1), 4)
    q2 = jax.random.normal(kq2, (B2, Lq2, D2), dtype=jnp.float32)
    k2 = jax.random.normal(kk2, (B2, Lk2, D2), dtype=jnp.float32)
    v2 = jax.random.normal(kv2, (B2, Lk2, Dv2), dtype=jnp.float32)
    m2 = (jax.random.uniform(km2, (B2, Lk2)) < 0.2).astype(jnp.int8)

    out6, attn6 = scaled_dot_product_attention(
        q2, k2, v2, m2, temperature=temperature2, attn_type="softmax")
    jax.block_until_ready((out6, attn6))
    ref_out6, ref_attn6 = _reference(q2, k2, v2, m2, temperature2)
    assert jnp.allclose(out6, ref_out6, atol=2e-3, rtol=2e-3), "output mismatch (tiled)"
    assert jnp.allclose(attn6, ref_attn6, atol=2e-3, rtol=2e-3), "attn mismatch (tiled)"

    print("KERNEL_OK")
</pallas_src>

<mosaic_0001>
module attributes {stable_mosaic.version = 11 : i64} {
  func.func @_sdpa_kernel(%arg0: i32, %arg1: i32, %arg2: memref<1x8x32xf32, #tpu.memory_space<vmem>>, %arg3: memref<1x8x32xf32, #tpu.memory_space<vmem>>, %arg4: memref<1x8x32xf32, #tpu.memory_space<vmem>>, %arg5: memref<1x8x8xi32, #tpu.memory_space<vmem>>, %arg6: memref<1x8x32xf32, #tpu.memory_space<vmem>>, %arg7: memref<1x8x8xf32, #tpu.memory_space<vmem>>) attributes {dimension_semantics = [#tpu.dimension_semantics<parallel>, #tpu.dimension_semantics<arbitrary>], iteration_bounds = array<i64: 2, 1>, scalar_prefetch = 0 : i64, scratch_operands = 0 : i64, tpu.core_type = #tpu.core_type<tc>, window_params = [{transform_indices = @transform_0, window_bounds = array<i64: 1, 8, 32>}, {transform_indices = @transform_1, window_bounds = array<i64: 1, 8, 32>}, {transform_indices = @transform_2, window_bounds = array<i64: 1, 8, 32>}, {transform_indices = @transform_3, window_bounds = array<i64: 1, 8, 8>}, {transform_indices = @transform_4, window_bounds = array<i64: 1, 8, 32>}, {transform_indices = @transform_5, window_bounds = array<i64: 1, 8, 8>}]} {
    %c0 = arith.constant 0 : index
    %c0_0 = arith.constant 0 : index
    %c0_1 = arith.constant 0 : index
    %0 = vector.load %arg2[%c0, %c0_0, %c0_1] : memref<1x8x32xf32, #tpu.memory_space<vmem>>, vector<1x8x32xf32>
    %1 = vector.shape_cast %0 : vector<1x8x32xf32> to vector<8x32xf32>
    %c0_2 = arith.constant 0 : index
    %c0_3 = arith.constant 0 : index
    %c0_4 = arith.constant 0 : index
    %2 = vector.load %arg3[%c0_2, %c0_3, %c0_4] : memref<1x8x32xf32, #tpu.memory_space<vmem>>, vector<1x8x32xf32>
    %3 = vector.shape_cast %2 : vector<1x8x32xf32> to vector<8x32xf32>
    %c0_5 = arith.constant 0 : index
    %c0_6 = arith.constant 0 : index
    %c0_7 = arith.constant 0 : index
    %4 = vector.load %arg4[%c0_5, %c0_6, %c0_7] : memref<1x8x32xf32, #tpu.memory_space<vmem>>, vector<1x8x32xf32>
    %5 = vector.shape_cast %4 : vector<1x8x32xf32> to vector<8x32xf32>
    %cst = arith.constant dense<0.000000e+00> : vector<8x8xf32>
    %6 = tpu.matmul %1, %3, %cst {dimension_numbers = #tpu.dot_dimension_numbers<[1], [1], [0], [0], [0, 0, 1, 0], [], []>} : vector<8x32xf32>, vector<8x32xf32>, vector<8x8xf32> -> vector<8x8xf32>
    %cst_8 = arith.constant 0.176776692 : f32
    %7 = vector.broadcast %cst_8 : f32 to vector<8x8xf32>
    %8 = arith.mulf %6, %7 : vector<8x8xf32>
    %c0_9 = arith.constant 0 : index
    %c0_10 = arith.constant 0 : index
    %c0_11 = arith.constant 0 : index
    %9 = vector.load %arg5[%c0_9, %c0_10, %c0_11] : memref<1x8x8xi32, #tpu.memory_space<vmem>>, vector<1x8x8xi32>
    %10 = vector.shape_cast %9 : vector<1x8x8xi32> to vector<8x8xi32>
    %c0_i32 = arith.constant 0 : i32
    %11 = vector.broadcast %c0_i32 : i32 to vector<8x8xi32>
    %12 = arith.cmpi ne, %10, %11 : vector<8x8xi32>
    %cst_12 = arith.constant -1.000000e+06 : f32
    %13 = vector.broadcast %cst_12 : f32 to vector<8x8xf32>
    %14 = arith.select %12, %13, %8 : vector<8x8xi1>, vector<8x8xf32>
    %cst_13 = arith.constant dense<0xFF800000> : vector<8xf32>
    %15 = vector.multi_reduction <maximumf>, %14, %cst_13 [1] : vector<8x8xf32> to vector<8xf32>
    %16 = vector.shape_cast %15 : vector<8xf32> to vector<8x1xf32>
    %17 = vector.broadcast %16 : vector<8x1xf32> to vector<8x8xf32>
    %18 = arith.subf %14, %17 : vector<8x8xf32>
    %19 = math.exp %18 : vector<8x8xf32>
    %cst_14 = arith.constant dense<0.000000e+00> : vector<8xf32>
    %20 = vector.multi_reduction <add>, %19, %cst_14 [1] : vector<8x8xf32> to vector<8xf32>
    %21 = vector.shape_cast %20 : vector<8xf32> to vector<8x1xf32>
    %22 = vector.broadcast %21 : vector<8x1xf32> to vector<8x8xf32>
    %23 = arith.divf %19, %22 : vector<8x8xf32>
    %cst_15 = arith.constant dense<0.000000e+00> : vector<8x32xf32>
    %24 = tpu.matmul %23, %5, %cst_15 {dimension_numbers = #tpu.dot_dimension_numbers<[1], [0], [0], [1], [0, 0, 1, 1], [], []>} : vector<8x8xf32>, vector<8x32xf32>, vector<8x32xf32> -> vector<8x32xf32>
    %c0_16 = arith.constant 0 : index
    %c0_17 = arith.constant 0 : index
    %c0_18 = arith.constant 0 : index
    %25 = vector.load %arg6[%c0_16, %c0_17, %c0_18] : memref<1x8x32xf32, #tpu.memory_space<vmem>>, vector<1x8x32xf32>
    %26 = vector.shape_cast %25 : vector<1x8x32xf32> to vector<8x32xf32>
    %27 = vector.shape_cast %24 : vector<8x32xf32> to vector<1x8x32xf32>
    tpu.vector_store %arg6[%c0_16, %c0_17, %c0_18], %27 {strides = array<i32>} : memref<1x8x32xf32, #tpu.memory_space<vmem>>, vector<1x8x32xf32>,
    %c0_19 = arith.constant 0 : index
    %c0_20 = arith.constant 0 : index
    %c0_21 = arith.constant 0 : index
    %28 = vector.load %arg7[%c0_19, %c0_20, %c0_21] : memref<1x8x8xf32, #tpu.memory_space<vmem>>, vector<1x8x8xf32>
    %29 = vector.shape_cast %28 : vector<1x8x8xf32> to vector<8x8xf32>
    %30 = vector.shape_cast %23 : vector<8x8xf32> to vector<1x8x8xf32>
    tpu.vector_store %arg7[%c0_19, %c0_20, %c0_21], %30 {strides = array<i32>} : memref<1x8x8xf32, #tpu.memory_space<vmem>>, vector<1x8x8xf32>,
    return
  }
  func.func @transform_0(%arg0: i32, %arg1: i32) -> (i32, i32, i32) {
    %c0_i32 = arith.constant 0 : i32
    %c0_i32_0 = arith.constant 0 : i32
    return %arg0, %arg1, %c0_i32 : i32, i32, i32
  }
  func.func @transform_1(%arg0: i32, %arg1: i32) -> (i32, i32, i32) {
    %c0_i32 = arith.constant 0 : i32
    %c0_i32_0 = arith.constant 0 : i32
    %c0_i32_1 = arith.constant 0 : i32
    return %arg0, %c0_i32, %c0_i32_0 : i32, i32, i32
  }
  func.func @transform_2(%arg0: i32, %arg1: i32) -> (i32, i32, i32) {
    %c0_i32 = arith.constant 0 : i32
    %c0_i32_0 = arith.constant 0 : i32
    %c0_i32_1 = arith.constant 0 : i32
    return %arg0, %c0_i32, %c0_i32_0 : i32, i32, i32
  }
  func.func @transform_3(%arg0: i32, %arg1: i32) -> (i32, i32, i32) {
    %c0_i32 = arith.constant 0 : i32
    %c0_i32_0 = arith.constant 0 : i32
    return %arg0, %arg1, %c0_i32 : i32, i32, i32
  }
  func.func @transform_4(%arg0: i32, %arg1: i32) -> (i32, i32, i32) {
    %c0_i32 = arith.constant 0 : i32
    %c0_i32_0 = arith.constant 0 : i32
    return %arg0, %arg1, %c0_i32 : i32, i32, i32
  }
  func.func @transform_5(%arg0: i32, %arg1: i32) -> (i32, i32, i32) {
    %c0_i32 = arith.constant 0 : i32
    %c0_i32_0 = arith.constant 0 : i32
    return %arg0, %arg1, %c0_i32 : i32, i32, i32
  }
}

</mosaic_0001>

<bundles_post_ra>
// kernel: scaled_dot_product_attention.1
= control target key start
LH: loop header
LB: loop body
LE: loop exit
PB: predicated region body
PF: predicated region fallthrough
CT: control target
= control target key end

     0   :  { %s1510_s0 = inlined_call_operand.hbm [shape: f32[2,8,32], index: 0, kind: input, shape index: {}]   ;;  %s1511_s1 = inlined_call_operand.hbm [shape: f32[2,8,32], index: 1, kind: input, shape index: {}]   ;;  %s1512_s2 = inlined_call_operand.hbm [shape: f32[2,8,32], index: 2, kind: input, shape index: {}]   ;;  %s1513_s3 = inlined_call_operand.hbm [shape: s32[2,8,8], index: 3, kind: input, shape index: {}]   ;;  %s1514_s4 = inlined_call_operand.hbm [shape: f32[2,8,32], index: 4, kind: output, shape index: {0}]   ;;  %s1515_s5 = inlined_call_operand.hbm [shape: f32[2,8,8], index: 5, kind: output, shape index: {1}]  }
   0x1   :  { %1526 = sst [smem:[#allocation24_spill]] %s1511_s1 }
   0x2   :  { %11 = vsyncpa [#allocation3], 0 }
   0x3   :  { %13 = vsyncpa [#allocation3 + $0x1], 0 }
   0x4   :  { %14 = vsyncpa [#allocation6], 0 }
   0x5   :  { %16 = vsyncpa [#allocation6 + $0x1], 0 }
   0x6   :  { %17 = vsyncpa [#allocation9], 0 }
   0x7   :  { %19 = vsyncpa [#allocation9 + $0x1], 0 }
   0x8   :  { %20 = vsyncpa [#allocation4], 0 }
   0x9   :  { %22 = vsyncpa [#allocation4 + $0x1], 0 }
   0xa   :  { %23 = vsyncpa [#allocation12], 0 }
   0xb   :  { %25 = vsyncpa [#allocation12 + $0x1], 0  ;;  %s1178_s18 = smov 0   ;;  %s1180_s19 = smov 0  }
   0xc   :  { %s1182_s20 = smov 0   ;;  %s1184_s21 = smov 0  }
   0xd   :  { %s1186_s22 = smov 0   ;;  %s1188_s23 = smov 0  }
   0xe LB: > { %1527 = sst [smem:[#allocation18_spill]] %s1126_s20  ;;  %s1209_s24 = sadd.s32 4294967295, %s1138_s23   ;;  %s1138_s23 = sphi %s1188_s23, %s31_s23   ;;  %s1134_s22 = sphi %s1186_s22, %s1555_s22   ;;  %s1130_s21 = sphi %s1184_s21, %s1554_s21   ;;  %s1126_s20 = sphi %s1182_s20, %s1553_s20   ;;  %s1122_s19 = sphi %s1180_s19, %s1557_s19   ;;  %s1118_s18 = sphi %s1178_s18, %s1556_s18  }
   0xf   : > { %1528 = sst [smem:[#allocation19_spill]] %s1134_s22  ;;  %s767_s25 = sadd.s32 4294967294, %s1138_s23  }
  0x10   : > { %1529 = sst [smem:[#allocation20_spill]] %s1138_s23  ;;  %s43_s26 = sadd.s32 1, %s1134_s22 }
  0x11   : > { %s52_s27 = sadd.s32 1, %s1126_s20  ;;  %p45_p0 = scmp.ge.s32.totalorder %s43_s26, 2 }
  0x12   : > { %p59_p1 = scmp.ne.s32.totalorder %s1126_s20, %s1122_s19  ;;  %p60_p2 = scmp.eq.s32.totalorder %s1138_s23, 0 }
  0x13   : > { %p65_p3 = scmp.ne.s32.totalorder %s1122_s19, %s1118_s18  ;;  %s1559_s26 = smov (%p45_p0, %s43_s26), 0 }
  0x14   : > { %1530 = sst [smem:[#allocation21_spill]] %s1559_s26  ;;  %p1221_p4 = por %p60_p2, %p59_p1 }
  0x15   : > { %p66_p5 = scmp.eq.s32.totalorder %s1209_s24, 0  ;;  %s47_s29 = ssub.s32 %s1134_s22, %s1559_s26 }
  0x16   : > { %p171_p6 = scmp.eq.s32.totalorder %s1209_s24, 1  ;;  %p50_p7 = scmp.eq.s32.totalorder %s47_s29, 0 }
  0x17   : > { %p1229_p8 = por %p66_p5, %p65_p3  ;;  %p177_p10 = scmp.eq.s32.totalorder %s767_s25, 1 }
  0x18   : > { %p1233_p9 = por %p171_p6, %p59_p1  ;;  %p840_p13 = scmp.lt.s32.totalorder %s1138_s23, 2 }
  0x19   : > { %s1532_s30 = scalar_select %p1229_p8, 1, 0 }
  0x1a   : > { %s1533_s6 = scalar_select %p1233_p9, 1, 0 }
  0x1b   : > { %s1238_s7 = scalar_select %p50_p7, %s1126_s20, %s52_s27  }
  0x1c   : > { %p1240_p11 = por %p177_p10, %p65_p3  ;;  %s1247_s9 = sand.u32 1, %s1126_s20  }
  0x1d   : > { %1534 = sst [smem:[#allocation22_spill]] %s1238_s7  ;;  %s1250_s10 = sshll.u32 %s1247_s9, 3 }
  0x1e   : > { %s1535_s8 = scalar_select %p1240_p11, 1, 0 }
  0x1f   : > { %s1253_s11 = sshll.u32 %s1134_s22, 7  ;;  %p1257_p0 = pnand %p840_p13, %p1221_p4 }
  0x20   : > { %1536 = sst [smem:[#allocation23_spill]] %s1535_s8  ;;  %s244_s13 = sand.u32 1, %s1138_s23  }
  0x21   : > { %s1537_s12 = scalar_select %p1257_p0, 1, 0 }
  0x22   : > { %s1538_s1 = sld [smem:[#allocation24_spill]]  ;;  %s248_s17 = scalar_lea.vmem [#allocation5], %s1250_s10 }
  0x23   : > { %s255_s25 = sshll.u32 %s248_s17, 4  ;;  %s1273_s27 = scalar_lea.sflag [#allocation6], %s244_s13  ;;  %s1270_s25 = int_to_ptr.vmem [resolvable:$true] %s255_s25 }
  0x24   : > { %p1279_p4 = pneg %p1257_p0 }
  0x28   : > { %s1266_s16 = scalar_lea.hbm %s1538_s1, %s1253_s11  ;;  %s901_s17 = scalar_lea.hbm %s1538_s1, 256 }
  0x29   : > { %s896_s28 = scalar_lea.hbm %s1266_s16, 128  ;;  %p902_p7 = scmp.lt.u32.totalorder %s1266_s16, %s1538_s1 }
  0x2a   : > { %p897_p3 = scmp.ne.s32.totalorder %s1266_s16, %s896_s28  ;;  %p903_p10 = scmp.lt.u32.totalorder %s901_s17, %s896_s28 }
  0x2b   : > { %p905_p12 = scmp.lt.u32.totalorder %s896_s28, %s1266_s16 }
  0x2c   : > { %p899_p5 = pnand %p1279_p4, %p897_p3  ;;  %p904_p13 = por %p903_p10, %p902_p7 }
  0x2e   : > { %p900_p6 = pneg %p899_p5  ;;  %p906_p1 = por %p905_p12, %p904_p13 }
  0x30   : > { %p907_p2 = pnand %p906_p1, %p900_p6 }
  0x32   : > { %910 = shalt.err (!%p907_p2)
}
  0x33   : > { %s911_s13 = scalar_lea.vmem %s1270_s25, 128  ;;  %s1140_s14 = smov [#allocation5]  }
  0x34   : > { %p912_p3 = scmp.ne.s32.totalorder %s1270_s25, %s911_s13  ;;  %s916_s15 = sshll.u32 %s1140_s14, 4  ;;  %s917_s15 = int_to_ptr.vmem [resolvable:$false] %s916_s15 }
  0x35   : > { %s918_s22 = scalar_lea.vmem %s917_s15, 256  ;;  %p919_p9 = scmp.lt.s32.totalorder %s1270_s25, %s917_s15 }
  0x36   : > { %p914_p5 = pnand %p912_p3, %p1279_p4  ;;  %p920_p8 = scmp.lt.s32.totalorder %s918_s22, %s911_s13 }
  0x38   : > { %p915_p11 = pneg %p914_p5  ;;  %p921_p7 = por %p920_p8, %p919_p9 }
  0x3a   : > { %p922_p10 = pnand %p921_p7, %p915_p11 }
  0x3c   : > { %925 = shalt.err (!%p922_p10)
}
  0x3d   : > { %826 = dma.hbm_to_vmem [thread:$0]  (!%p1257_p0), %s1266_s16, 128, %s1270_s25, %s1273_s27  }
  0x3e   : > { %p1540_p12 = scmp.lt.s32.totalorder %s1138_s23, 3  ;;  %p1541_p1 = scmp.ge.s32.totalorder %s1138_s23, 1 }
  0x3f   : > { %s1315_s13 = scalar_lea.hbm %s1510_s0, %s1253_s11  ;;  %s229_s14 = scalar_lea.vmem [#allocation2], %s1250_s10 }
  0x40   : > { %p1307_p2 = pnand %p1541_p1, %p1540_p12  ;;  %s237_s15 = sshll.u32 %s229_s14, 4  ;;  %s1318_s15 = int_to_ptr.vmem [resolvable:$true] %s237_s15 }
  0x41   : > { %s1324_s22 = scalar_lea.hbm %s1512_s2, %s1253_s11  ;;  %s226_s1 = scalar_lea.sflag [#allocation3], %s1247_s9 }
  0x42   : > { %s1542_s26 = scalar_select %p1307_p2, 1, 0 }
  0x43   : > { %s926_s7 = scalar_lea.hbm %s1315_s13, 128  ;;  %s931_s20 = scalar_lea.hbm %s1510_s0, 256 }
  0x44   : > { %p927_p8 = scmp.ne.s32.totalorder %s1315_s13, %s926_s7  ;;  %p932_p6 = scmp.lt.u32.totalorder %s1315_s13, %s1510_s0 }
  0x45   : > { %p933_p13 = scmp.lt.u32.totalorder %s931_s20, %s926_s7  ;;  %p935_p5 = scmp.lt.u32.totalorder %s926_s7, %s1315_s13 }
  0x46   : > { %p929_p9 = pnand %p927_p8, %p1279_p4 }
  0x47   : > { %p934_p3 = por %p933_p13, %p932_p6 }
  0x48   : > { %p930_p11 = pneg %p929_p9 }
  0x49   : > { %p936_p7 = por %p935_p5, %p934_p3 }
  0x4b   : > { %p937_p10 = pnand %p936_p7, %p930_p11 }
  0x4d   : > { %940 = shalt.err (!%p937_p10)
}
  0x4e   : > { %s941_s14 = scalar_lea.vmem %s1318_s15, 128  ;;  %s1141_s16 = smov [#allocation2]  }
  0x4f   : > { %p942_p12 = scmp.ne.s32.totalorder %s1318_s15, %s941_s14  ;;  %s946_s25 = sshll.u32 %s1141_s16, 4  ;;  %s947_s25 = int_to_ptr.vmem [resolvable:$false] %s946_s25 }
  0x50   : > { %s948_s23 = scalar_lea.vmem %s947_s25, 256  ;;  %p949_p9 = scmp.lt.s32.totalorder %s1318_s15, %s947_s25 }
  0x51   : > { %p944_p1 = pnand %p942_p12, %p1279_p4  ;;  %p950_p2 = scmp.lt.s32.totalorder %s948_s23, %s941_s14 }
  0x53   : > { %p945_p8 = pneg %p944_p1  ;;  %p951_p6 = por %p950_p2, %p949_p9 }
  0x55   : > { %p952_p13 = pnand %p951_p6, %p945_p8 }
  0x57   : > { %955 = shalt.err (!%p952_p13)
}
  0x58   : > { %823 = dma.hbm_to_vmem [thread:$0]  (!%p1257_p0), %s1315_s13, 128, %s1318_s15, %s226_s1  }
  0x59   : > { %s266_s20 = scalar_lea.vmem [#allocation7], %s1250_s10  ;;  %s956_s8 = scalar_lea.hbm %s1324_s22, 128 }
  0x5a   : > { %s273_s7 = sshll.u32 %s266_s20, 4  ;;  %p957_p11 = scmp.ne.s32.totalorder %s1324_s22, %s956_s8  ;;  %s274_s7 = int_to_ptr.vmem [resolvable:$true] %s273_s7 }
  0x5b   : > { %s961_s14 = scalar_lea.hbm %s1512_s2, 256  ;;  %p962_p5 = scmp.lt.u32.totalorder %s1324_s22, %s1512_s2 }
  0x5c   : > { %p959_p2 = pnand %p957_p11, %p1279_p4  ;;  %p963_p7 = scmp.lt.u32.totalorder %s961_s14, %s956_s8 }
  0x5d   : > { %p965_p12 = scmp.lt.u32.totalorder %s956_s8, %s1324_s22 }
  0x5e   : > { %p960_p3 = pneg %p959_p2  ;;  %p964_p10 = por %p963_p7, %p962_p5 }
  0x60   : > { %p966_p1 = por %p965_p12, %p964_p10 }
  0x62   : > { %p967_p8 = pnand %p966_p1, %p960_p3 }
  0x64   : > { %970 = shalt.err (!%p967_p8)
}
  0x65   : > { %s971_s1 = scalar_lea.vmem %s274_s7, 128  ;;  %s1142_s13 = smov [#allocation7]  }
  0x66   : > { %p972_p9 = scmp.ne.s32.totalorder %s274_s7, %s971_s1  ;;  %s976_s15 = sshll.u32 %s1142_s13, 4  ;;  %s977_s15 = int_to_ptr.vmem [resolvable:$false] %s976_s15 }
  0x67   : > { %s978_s23 = scalar_lea.vmem %s977_s15, 256  ;;  %p979_p11 = scmp.lt.s32.totalorder %s274_s7, %s977_s15 }
  0x68   : > { %p974_p6 = pnand %p972_p9, %p1279_p4  ;;  %p980_p2 = scmp.lt.s32.totalorder %s978_s23, %s971_s1 }
  0x6a   : > { %p975_p13 = pneg %p974_p6  ;;  %p981_p0 = por %p980_p2, %p979_p11 }
  0x6c   : > { %p982_p5 = pnand %p981_p0, %p975_p13 }
  0x6e   : > { %985 = shalt.err (!%p982_p5)
}
  0x6f   : > { %p1543_p7 = scmp.ne.s32.totalorder %s1537_s12, 0  ;;  %s1371_s28 = scalar_lea.hbm %s1513_s3, %s1253_s11 }
  0x70   : > { %s284_s17 = scalar_lea.vmem [#allocation8], %s1250_s10  ;;  %s281_s16 = scalar_lea.sflag [#allocation9], %s1247_s9 }
  0x71   : > { %829 = dma.hbm_to_vmem [thread:$0]  (!%p1543_p7), %s1324_s22, 128, %s274_s7, %s1273_s27  }
  0x72   : > { %s292_s14 = sshll.u32 %s284_s17, 4  ;;  %s986_s25 = scalar_lea.hbm %s1371_s28, 128  ;;  %s293_s14 = int_to_ptr.vmem [resolvable:$true] %s292_s14 }
  0x73   : > { %p987_p0 = scmp.ne.s32.totalorder %s1371_s28, %s986_s25  ;;  %s991_s22 = scalar_lea.hbm %s1513_s3, 256 }
  0x74   : > { %p992_p12 = scmp.lt.u32.totalorder %s1371_s28, %s1513_s3  ;;  %p993_p1 = scmp.lt.u32.totalorder %s991_s22, %s986_s25 }
  0x75   : > { %p989_p3 = pnand %p987_p0, %p1279_p4  ;;  %p995_p9 = scmp.lt.u32.totalorder %s986_s25, %s1371_s28 }
  0x76   : > { %p994_p8 = por %p993_p1, %p992_p12 }
  0x77   : > { %p990_p10 = pneg %p989_p3 }
  0x78   : > { %p996_p6 = por %p995_p9, %p994_p8 }
  0x7a   : > { %p997_p13 = pnand %p996_p6, %p990_p10 }
  0x7c   : > { %1000 = shalt.err (!%p997_p13)
}
  0x7d   : > { %s1001_s9 = scalar_lea.vmem %s293_s14, 128  ;;  %s1143_s10 = smov [#allocation8]  }
  0x7e   : > { %p1002_p11 = scmp.ne.s32.totalorder %s293_s14, %s1001_s9  ;;  %s1006_s13 = sshll.u32 %s1143_s10, 4  ;;  %s1007_s13 = int_to_ptr.vmem [resolvable:$false] %s1006_s13 }
  0x7f   : > { %s1008_s15 = scalar_lea.vmem %s1007_s13, 256  ;;  %p1009_p0 = scmp.lt.s32.totalorder %s293_s14, %s1007_s13 }
  0x80   : > { %p1004_p2 = pnand %p1002_p11, %p1279_p4  ;;  %p1010_p3 = scmp.lt.s32.totalorder %s1008_s15, %s1001_s9 }
  0x82   : > { %p1005_p5 = pneg %p1004_p2  ;;  %p1011_p7 = por %p1010_p3, %p1009_p0 }
  0x84   : > { %p1012_p1 = pnand %p1011_p7, %p1005_p5 }
  0x86   : > { %1015 = shalt.err (!%p1012_p1)
}
  0x87   : > { %p1544_p12 = scmp.ne.s32.totalorder %s1537_s12, 0  ;;  %p1545_p10 = scmp.ne.s32.totalorder %s1542_s26, 0 }
  0x88   : > { %s1395_s29 = sand.u32 (!%p1545_p10), 1, %s1122_s19   ;;  %p1546_p4 = scmp.ne.s32.totalorder (!%p1545_p10), %s1532_s30, 0 }
  0x89   : > { %832 = dma.hbm_to_vmem [thread:$0]  (!%p1544_p12), %s1371_s28, 128, %s293_s14, %s281_s16  }
  0x8a   : > { %301 = sbr.rel (%p1545_p10) target bundleno = 913 (0x391), region = 36  ;;  %s1398_s23 = sshll.u32 (!%p1545_p10), %s1395_s29, 3 }
  0x8b   : > { %s304_s20 = scalar_lea.sflag (!%p1545_p10), [#allocation3], %s1395_s29  ;;  %s307_s8 = scalar_lea.vmem (!%p1545_p10), [#allocation2], %s1398_s23 }
  0x91   : > { %1097 = dma.done.wait (%p1546_p4), %s304_s20, 128  }
  0x92   : > { %1099 = vsyncadd (%p1546_p4), %s304_s20, 4294967168  ;;  %s312_s12 = sand.u32 1, %s1209_s24   ;;  %s316_s28 = scalar_lea.vmem [#allocation5], %s1398_s23 }
  0x93   : > { %s313_s26 = scalar_lea.sflag [#allocation6], %s312_s12 }
  0x94   : > { %1101 = dma.done.wait (%p1546_p4), %s313_s26, 256  }
  0x95   : > { %1103 = vsyncadd (%p1546_p4), %s313_s26, 4294967040  ;;  %s325_s17 = scalar_lea.vmem [#allocation7], %s1398_s23  ;;  %s331_s14 = scalar_lea.sflag [#allocation9], %s1395_s29 }
  0x96   : > { %s334_s16 = scalar_lea.vmem [#allocation8], %s1398_s23 }
  0x97   : > { %1105 = dma.done.wait (%p1546_p4), %s331_s14, 128  }
  0x98   : > { %1107 = vsyncadd (%p1546_p4), %s331_s14, 4294967168  ;;  %v1144_v0 = vmov 0.0   ;;  %vm1145_vm0 = vmmov 0   ;;  %vm384_vm1 = vcmask 261120   ;;  %v382_v1 = vld [vmem:[%s316_s28] sm:$0xff]  ;;  %v381_v2 = vld [vmem:[%s307_s8] sm:$0xff] }
  0x99   : > { %798 = vmatprep.subr.mxu0 %v1144_v0  ;;  %800 = vmatprep.mubr.msk.f32.mxu0 %vm1145_vm0, %v1144_v0  ;;  %v462_v3 = vld [vmem:[%s334_s16] sm:$0xff]  ;;  %vm465_vm3 = vcmask 64512   ;;  %v383_v14 = vld [vmem:[%s325_s17] sm:$0xff]  ;;  %s380_s24 = scalar_lea.vmem [#allocation11], %s1398_s23  ;;  %s790_s30 = sshll.u32 %s1130_s21, 7 }
  0x9a   : > { %803 = vmatprep.subr.mxu1 %v1144_v0  ;;  %805 = vmatprep.mubr.msk.f32.mxu1 %vm1145_vm0, %v1144_v0  ;;  %vm463_vm2 = vcmp.ne.s32.totalorder %v462_v3, 0  ;;  %s1434_s27 = scalar_lea.hbm %s1515_s5, %s790_s30  ;;  %s586_s22 = sshll.u32 %s380_s24, 4  ;;  %s587_s22 = int_to_ptr.vmem [resolvable:$true] %s586_s22 }
  0x9b   : > { %799 = vmatpush3.xpose.msk.msra.mxu0 %vm384_vm1, %v382_v1  ;;  %804 = vmatpush3.msra.mxu1 %v383_v14  ;;  %s558_s7 = scalar_lea.sflag [#allocation12], %s1395_s29  ;;  %s1016_s11 = scalar_lea.vmem %s587_s22, 128 }
  0x9c   : > { %p1017_p7 = scmp.ne.s32.totalorder %s587_s22, %s1016_s11  ;;  %p1547_p8 = scmp.ne.s32.totalorder %s1533_s6, 0 }
  0x9d   : > { %s1146_s9 = smov [#allocation11]  }
  0x9e   : > { %801 = vmatmul.mubr.msk.f32.vlgmr.msra.gmra.mrb[0].mxu0 %vm384_vm1, %v381_v2  ;;  %p1018_p9 = pnand %p1017_p7, %p1547_p8  ;;  %s1020_s10 = sshll.u32 %s1146_s9, 4  ;;  %s1021_s10 = int_to_ptr.vmem [resolvable:$false] %s1020_s10 }
  0x9f   : > { %s1022_s13 = scalar_lea.vmem %s1021_s10, 256  ;;  %p1023_p13 = scmp.lt.s32.totalorder %s587_s22, %s1021_s10 }
  0xa0   : > { %p1019_p6 = pneg %p1018_p9  ;;  %p1024_p11 = scmp.lt.s32.totalorder %s1022_s13, %s1016_s11 }
  0xa2   : > { %p1025_p2 = por %p1024_p11, %p1023_p13 }
  0xa4   : > { %p1026_p5 = pnand %p1025_p2, %p1019_p6 }
 0x171   : > { %v457_v4 = vpop.f32.mrb[0].mxu0 }
 0x172   : > { %v461_v5 = vmul.f32 0.17677669, %v457_v4  ;;  %v802_v6 = vpop.f32.mrb[1].mxu0 }
 0x174   : > { %v464_v7 = vsel %vm463_vm2, -1000000.0, %v461_v5 }
 0x175   : > { %v466_v8 = vsel %vm465_vm3, %v464_v7, -inf }
 0x176   : > { %467 = vmax.xlane.f32.xlu0 %v466_v8 }
 0x203   : > { %v468_v9 = vpop.xlane.xlu0 %467 }
 0x204   : > { %v469_v10 = vsub.f32 %v464_v7, %v468_v9 }
 0x206   : > { %v470_v11 = vmul.f32 1.442695, %v469_v10 }
 0x208   : > { %892 = vpow2.f32 %v470_v11 }
 0x212   : > { %v893_v12 = vpop.eup %892 }
 0x213   : > { %v472_v13 = vsel %vm465_vm3, %v893_v12, 0.0 }
 0x214   : > { %473 = vadd.xlane.f32.xlu0 %v472_v13 }
 0x2a1   : > { %v474_v15 = vpop.xlane.xlu0 %473 }
 0x2a2   : > { %894 = vrcp.f32 %v474_v15 }
 0x2ac   : > { %v895_v16 = vpop.eup %894 }
 0x2ad   : > { %v476_v17 = vmul.f32 %v895_v16, %v893_v12 }
 0x2af   : > { %806 = vmatmul.mubr.msk.f32.vlgmr.msra.gmra.mrb[0].mxu1 %vm465_vm3, %v476_v17  ;;  %551 = vst.msk [vmem:[%s380_s24] sm:$0xff] %vm465_vm3, %v476_v17 }
 0x2b0   : > { %1029 = shalt.err (!%p1026_p5)
}
 0x2b1   : > { %s1030_s15 = scalar_lea.hbm %s1434_s27, 128  ;;  %s1034_s12 = scalar_lea.hbm %s1515_s5, 256 }
 0x2b2   : > { %p1031_p0 = scmp.ne.s32.totalorder %s1434_s27, %s1030_s15  ;;  %p1035_p12 = scmp.lt.u32.totalorder %s1434_s27, %s1515_s5 }
 0x2b3   : > { %p1036_p10 = scmp.lt.u32.totalorder %s1034_s12, %s1030_s15  ;;  %p1038_p7 = scmp.lt.u32.totalorder %s1030_s15, %s1434_s27 }
 0x2b4   : > { %p1032_p3 = pnand %p1031_p0, %p1547_p8 }
 0x2b5   : > { %p1037_p4 = por %p1036_p10, %p1035_p12 }
 0x2b6   : > { %p1033_p1 = pneg %p1032_p3 }
 0x2b7   : > { %p1039_p9 = por %p1038_p7, %p1037_p4 }
 0x2b9   : > { %p1040_p6 = pnand %p1039_p9, %p1033_p1 }
 0x2bb   : > { %1043 = shalt.err (!%p1040_p6)
}
 0x2bc   : > { %817 = dma.vmem_to_hbm [thread:$0]  (%p1547_p8), %s587_s22, 128, %s1434_s27, %s558_s7  }
 0x2bd   : > { %s373_s17 = scalar_lea.vmem [#allocation10], %s1398_s23  ;;  %s1460_s25 = scalar_lea.hbm %s1514_s4, %s790_s30 }
 0x2be   : > { %s572_s14 = sshll.u32 %s373_s17, 4  ;;  %s553_s1 = scalar_lea.sflag [#allocation4], %s1395_s29  ;;  %s1462_s14 = int_to_ptr.vmem [resolvable:$true] %s572_s14 }
 0x2bf   : > { %s1044_s11 = scalar_lea.vmem %s1462_s14, 128  ;;  %s1147_s21 = smov [#allocation10]  }
 0x2c0   : > { %p1045_p13 = scmp.ne.s32.totalorder %s1462_s14, %s1044_s11  ;;  %s1048_s23 = sshll.u32 %s1147_s21, 4  ;;  %s1049_s23 = int_to_ptr.vmem [resolvable:$false] %s1048_s23 }
 0x2c1   : > { %s1050_s30 = scalar_lea.vmem %s1049_s23, 256  ;;  %p1051_p5 = scmp.lt.s32.totalorder %s1462_s14, %s1049_s23 }
 0x2c2   : > { %p1046_p11 = pnand %p1045_p13, %p1547_p8  ;;  %p1052_p0 = scmp.lt.s32.totalorder %s1050_s30, %s1044_s11 }
 0x2c4   : > { %p1047_p2 = pneg %p1046_p11  ;;  %p1053_p3 = por %p1052_p0, %p1051_p5 }
 0x2c6   : > { %p1054_p1 = pnand %p1053_p3, %p1047_p2 }
 0x382   : > { %v546_v18 = vpop.f32.mrb[0].mxu1 }
 0x383   : > { %550 = vst.msk [vmem:[%s373_s17] sm:$0xff] %vm384_vm1, %v546_v18  ;;  %v807_v19 = vpop.f32.mrb[1].mxu1 }
 0x384   : > { %1057 = shalt.err (!%p1054_p1)
}
 0x385   : > { %s1058_s29 = scalar_lea.hbm %s1460_s25, 128  ;;  %s1062_s7 = scalar_lea.hbm %s1514_s4, 256 }
 0x386   : > { %p1059_p12 = scmp.ne.s32.totalorder %s1460_s25, %s1058_s29  ;;  %p1063_p7 = scmp.lt.u32.totalorder %s1460_s25, %s1514_s4 }
 0x387   : > { %p1064_p9 = scmp.lt.u32.totalorder %s1062_s7, %s1058_s29  ;;  %p1066_p13 = scmp.lt.u32.totalorder %s1058_s29, %s1460_s25 }
 0x388   : > { %p1060_p10 = pnand %p1059_p12, %p1547_p8 }
 0x389   : > { %p1065_p6 = por %p1064_p9, %p1063_p7 }
 0x38a   : > { %p1061_p4 = pneg %p1060_p10 }
 0x38b   : > { %p1067_p11 = por %p1066_p13, %p1065_p6 }
 0x38d   : > { %p1068_p2 = pnand %p1067_p11, %p1061_p4 }
 0x38f   : > { %1071 = shalt.err (!%p1068_p2)
}
 0x390   : > { %816 = dma.vmem_to_hbm [thread:$0]  (%p1547_p8), %s1462_s14, 128, %s1460_s25, %s553_s1  }
 0x391 PF: > { %s1548_s13 = sld [smem:[#allocation23_spill]]  ;;  %s1549_s15 = sld [smem:[#allocation20_spill]] }
 0x392   : > { %s598_s20 = sand.u32 1, %s1118_s18  }
 0x393   : > { %s599_s8 = scalar_lea.sflag [#allocation4], %s598_s20 }
 0x397   : > { %p1550_p5 = scmp.ne.s32.totalorder %s1548_s13, 0  ;;  %p1551_p0 = scmp.ge.s32.totalorder %s1549_s15, 2 }
 0x399   : > { %p834_p3 = pnand %p1551_p0, %p1550_p5 }
 0x39b   : > { %1109 = dma.done.wait (!%p834_p3), %s599_s8, 128  }
 0x39c   : > { %1111 = vsyncadd (!%p834_p3), %s599_s8, 4294967168  ;;  %s608_s12 = scalar_lea.sflag [#allocation12], %s598_s20 }
 0x39d   : > { %1113 = dma.done.wait (!%p834_p3), %s608_s12, 128  }
 0x39e   : > { %1115 = vsyncadd (!%p834_p3), %s608_s12, 4294967168  ;;  %s31_s23 = sadd.s32 1, %s1549_s15   ;;  %s1552_s6 = sld [smem:[#allocation18_spill]] }
 0x39f   : > { %p28_p1 = scmp.ge.s32.totalorder %s31_s23, 4   ;;  %s1553_s20 = sld [smem:[#allocation22_spill]] }
 0x3a0   : > { %s1554_s21 = sld [smem:[#allocation19_spill]]  ;;  %s1555_s22 = sld [smem:[#allocation21_spill]] }
 0x3a1   : > { %s1556_s18 = smov %s1122_s19  ;;  %30 = sbr.rel (!%p28_p1) target bundleno = 14 (0xe), region = 135 }
 0x3a4   : > { %s1557_s19 = smov %s1552_s6 }
 0x3a8   :  { %613 = vsyncpa [#allocation3], 1 }
 0x3a9   :  { %615 = vsyncpa [#allocation3 + $0x1], 1 }
 0x3aa   :  { %616 = vsyncpa [#allocation6], 1 }
 0x3ab   :  { %618 = vsyncpa [#allocation6 + $0x1], 1 }
 0x3ac   :  { %619 = vsyncpa [#allocation9], 1 }
 0x3ad   :  { %621 = vsyncpa [#allocation9 + $0x1], 1 }
 0x3ae   :  { %622 = vsyncpa [#allocation4], 1 }
 0x3af   :  { %624 = vsyncpa [#allocation4 + $0x1], 1 }
 0x3b0   :  { %625 = vsyncpa [#allocation12], 1 }
 0x3b1   :  { %627 = vsyncpa [#allocation12 + $0x1], 1 }

</bundles_post_ra>
